<compile_context>
chip_gen: v7x
topology: tpu7x:2x2x1
jax: 0.10.0
libtpu: 0.0.40
codegen_flags: <defaults>
</compile_context>

<pallas_src>
import jax
import jax.numpy as jnp
from jax.experimental import pallas as pl
from jax.experimental.pallas import tpu as pltpu


D_EMBED = 32                 # d_embed of the PyTorch module
PACK = 4                     # rows packed per 128-lane vector (4 * 32 = 128)
D_PACK = PACK * D_EMBED      # 128
DOUT = 4                     # per original row: 3 corr + 1 overlap
D_OUT_PACK = PACK * DOUT     # 16
MAX_TILE = 2048              # packed-row tile cap (x tile = 2048*128*4B = 1 MiB)


def _round_up(x, m):
    return (x + m - 1) // m * m


def _pick_tile(m_pack):
    """Large tiles amortize per-grid-step overhead; keep >= 2 grid steps when
    possible so both v7x TensorCores get work."""
    half = -(-m_pack // 2)
    return min(MAX_TILE, max(8, _round_up(half, 8)))


# ----------------------------- Pallas kernel --------------------------------
def _regressor_kernel(x_ref, w1_ref, b1_ref, w2_ref, b2_ref,
                      w3_ref, wc_ref, bh_ref, out_ref):
    x = x_ref[...]                                                   # (TM, 128)
    h = jnp.dot(x, w1_ref[...], preferred_element_type=jnp.float32) + b1_ref[...]
    h = jnp.maximum(h, 0.0)                                          # ReLU
    h = jnp.dot(h, w2_ref[...], preferred_element_type=jnp.float32) + b2_ref[...]
    h = jnp.maximum(h, 0.0)                                          # ReLU
    # Fused lane-interleaved head: columns are [cx, cy, cz, overlap] * PACK.
    out_ref[...] = (jnp.dot(h, w3_ref[...], preferred_element_type=jnp.float32)
                    + jnp.dot(x, wc_ref[...], preferred_element_type=jnp.float32)
                    + bh_ref[...])                                   # (TM, 16)


def _run_regressor_packed(x_pack, packed_params, tm):
    """x_pack: (M_pack, 128) f32 -> (M_pack, 16) f32 fused [corr|overlap]."""
    (w1p, b1p, w2p, b2p, w3p, wcp, bhp) = packed_params
    m_pack = x_pack.shape[0]
    grid = (pl.cdiv(m_pack, tm),)             # partial last block is masked
    full = lambda shape: pl.BlockSpec(shape, lambda i: (0, 0))

    return pl.pallas_call(
        _regressor_kernel,
        out_shape=jax.ShapeDtypeStruct((m_pack, D_OUT_PACK), jnp.float32),
        grid_spec=pltpu.PrefetchScalarGridSpec(
            num_scalar_prefetch=0,
            grid=grid,
            in_specs=[
                pl.BlockSpec((tm, D_PACK), lambda i: (i, 0)),        # x tile
                full((D_PACK, D_PACK)), full((1, D_PACK)),           # W1, b1
                full((D_PACK, D_PACK)), full((1, D_PACK)),           # W2, b2
                full((D_PACK, D_OUT_PACK)),                          # corr head
                full((D_PACK, D_OUT_PACK)),                          # overlap head
                full((1, D_OUT_PACK)),                               # fused bias
            ],
            out_specs=pl.BlockSpec((tm, D_OUT_PACK), lambda i: (i, 0)),
        ),
        compiler_params=pltpu.CompilerParams(
            dimension_semantics=("parallel",)),
    )(x_pack, w1p, b1p, w2p, b2p, w3p, wcp, bhp)


# -------------------------- parameter preparation ---------------------------
def init_params(d_embed, key):
    """nn.Linear-style init; weights stored (in, out), biases (1, out)."""
    ks = jax.random.split(key, 8)

    def lin(kw, kb, fan_in, fan_out):
        bound = 1.0 / (fan_in ** 0.5)
        w = jax.random.uniform(kw, (fan_in, fan_out), jnp.float32, -bound, bound)
        b = jax.random.uniform(kb, (1, fan_out), jnp.float32, -bound, bound)
        return w, b

    w1, b1 = lin(ks[0], ks[1], d_embed, d_embed)
    w2, b2 = lin(ks[2], ks[3], d_embed, d_embed)
    w3, b3 = lin(ks[4], ks[5], d_embed, 3)
    wc, bc = lin(ks[6], ks[7], d_embed, 1)
    return (w1, b1, w2, b2, w3, b3, wc, bc)


def pack_params(params):
    """Build lane-packed (block-diagonal) weights for the kernel.  Done once."""
    (w1, b1, w2, b2, w3, b3, wc, bc) = params
    d = w1.shape[0]

    def block_diag(w):
        dout = w.shape[1]
        out = jnp.zeros((PACK * d, PACK * dout), jnp.float32)
        for j in range(PACK):
            out = out.at[j * d:(j + 1) * d, j * dout:(j + 1) * dout].set(w)
        return out

    w1p = block_diag(w1)                    # (128, 128)
    w2p = block_diag(w2)                    # (128, 128)
    b1p = jnp.tile(b1, (1, PACK))           # (1, 128)
    b2p = jnp.tile(b2, (1, PACK))           # (1, 128)

    # Fused head: output columns per packed sub-row are [cx, cy, cz, overlap].
    w3p = jnp.zeros((PACK * d, PACK * DOUT), jnp.float32)
    wcp = jnp.zeros((PACK * d, PACK * DOUT), jnp.float32)
    for j in range(PACK):
        w3p = w3p.at[j * d:(j + 1) * d, j * DOUT:j * DOUT + 3].set(w3)
        wcp = wcp.at[j * d:(j + 1) * d, j * DOUT + 3:j * DOUT + 4].set(wc)
    bhp = jnp.tile(jnp.concatenate([b3, bc], axis=1), (1, PACK))   # (1, 16)
    return (w1p, b1p, w2p, b2p, w3p, wcp, bhp)


# ------------------------------ forward glue ---------------------------------
@jax.jit
def _apply_features(feats, packed_params):
    """feats: (N, B, D) -> (corr (N,B,3), overlap (N,B,1))."""
    n, b, d = feats.shape
    m = n * b
    x = feats.reshape(m, d)                         # free row-major collapse
    m4 = _round_up(m, PACK)
    if m4 != m:                                     # tiny pad only when needed
        x = jnp.pad(x, ((0, m4 - m), (0, 0)))
    x_pack = x.reshape(m4 // PACK, PACK * d)        # (M/4, 128), free re-view
    tm = _pick_tile(m4 // PACK)
    out = _run_regressor_packed(x_pack, packed_params, tm)    # (M/4, 16)
    out = out.reshape(m4, DOUT)[:m]                 # (M, 4)
    corr = out[:, :3].reshape(n, b, 3)
    overlap = out[:, 3:4].reshape(n, b, 1)
    return corr, overlap


def unpad_sequences(padded, lens):
    """padded: (N_max, B, C) -> list of (lens[b], C)."""
    return [padded[:lens[b], b, :] for b in range(len(lens))]


def correspondence_regressor_forward(packed_params, src_feats_padded,
                                     tgt_feats_padded, src_xyz, tgt_xyz):
    # Only the sequence lengths are needed from the xyz lists (as in PyTorch);
    # no padded/mask device arrays are built.
    src_lens = [int(s.shape[0]) for s in src_xyz]
    tgt_lens = [int(t.shape[0]) for t in tgt_xyz]

    # Two launches (src, tgt) through the same jitted kernel; concatenating
    # would cost an extra full HBM round-trip of the features.
    src_corr, src_overlap = _apply_features(src_feats_padded, packed_params)
    tgt_corr, tgt_overlap = _apply_features(tgt_feats_padded, packed_params)

    src_corr_list = unpad_sequences(src_corr, src_lens)
    tgt_corr_list = unpad_sequences(tgt_corr, tgt_lens)
    src_overlap_list = unpad_sequences(src_overlap, src_lens)
    tgt_overlap_list = unpad_sequences(tgt_overlap, tgt_lens)
    return src_corr_list, tgt_corr_list, src_overlap_list, tgt_overlap_list


# --------------------------- pure-JAX reference ------------------------------
def _reference_flat(x, params):
    (w1, b1, w2, b2, w3, b3, wc, bc) = params
    h = jnp.maximum(x @ w1 + b1, 0.0)
    h = jnp.maximum(h @ w2 + b2, 0.0)
    return h @ w3 + b3, x @ wc + bc


if __name__ == "__main__":
    key = jax.random.PRNGKey(0)
    (k_fs, k_ft, k_xs0, k_xs1, k_xt0, k_xt1, k_param) = jax.random.split(key, 7)

    B = 2
    src_lens = [50, 37]          # N_src*B = 100 -> M_pack=25 (partial block)
    tgt_lens = [45, 61]          # N_tgt*B = 122 -> exercises pad-to-4 path
    N_src, N_tgt = max(src_lens), max(tgt_lens)

    src_feats = jax.random.normal(k_fs, (N_src, B, D_EMBED), jnp.float32)
    tgt_feats = jax.random.normal(k_ft, (N_tgt, B, D_EMBED), jnp.float32)
    src_xyz = [jax.random.normal(k_xs0, (src_lens[0], 3), jnp.float32),
               jax.random.normal(k_xs1, (src_lens[1], 3), jnp.float32)]
    tgt_xyz = [jax.random.normal(k_xt0, (tgt_lens[0], 3), jnp.float32),
               jax.random.normal(k_xt1, (tgt_lens[1], 3), jnp.float32)]

    params = init_params(D_EMBED, k_param)
    packed_params = pack_params(params)

    out = correspondence_regressor_forward(packed_params, src_feats, tgt_feats,
                                           src_xyz, tgt_xyz)
    out = jax.block_until_ready(out)
    src_corr_list, tgt_corr_list, src_overlap_list, tgt_overlap_list = out

    # correctness check against pure-JAX reference (unpacked params)
    for name, feats, lens, corr_list, ov_list in [
            ("src", src_feats, src_lens, src_corr_list, src_overlap_list),
            ("tgt", tgt_feats, tgt_lens, tgt_corr_list, tgt_overlap_list)]:
        n, b_, _ = feats.shape
        ref_c, ref_o = _reference_flat(feats.reshape(-1, D_EMBED), params)
        ref_c = ref_c.reshape(n, b_, 3)
        ref_o = ref_o.reshape(n, b_, 1)
        for bb in range(b_):
            assert corr_list[bb].shape == (lens[bb], 3), name
            assert ov_list[bb].shape == (lens[bb], 1), name
            assert jnp.allclose(corr_list[bb], ref_c[:lens[bb], bb], atol=1e-4), name
            assert jnp.allclose(ov_list[bb], ref_o[:lens[bb], bb], atol=1e-4), name

    print("KERNEL_OK")
</pallas_src>

<mosaic_0001>
module attributes {stable_mosaic.version = 11 : i64} {
  func.func @_regressor_kernel(%arg0: i32, %arg1: memref<16x128xf32, #tpu.memory_space<vmem>>, %arg2: memref<128x128xf32, #tpu.memory_space<vmem>>, %arg3: memref<1x128xf32, #tpu.memory_space<vmem>>, %arg4: memref<128x128xf32, #tpu.memory_space<vmem>>, %arg5: memref<1x128xf32, #tpu.memory_space<vmem>>, %arg6: memref<128x16xf32, #tpu.memory_space<vmem>>, %arg7: memref<128x16xf32, #tpu.memory_space<vmem>>, %arg8: memref<1x16xf32, #tpu.memory_space<vmem>>, %arg9: memref<16x16xf32, #tpu.memory_space<vmem>>) attributes {dimension_semantics = [#tpu.dimension_semantics<parallel>], iteration_bounds = array<i64: 2>, scalar_prefetch = 0 : i64, scratch_operands = 0 : i64, tpu.core_type = #tpu.core_type<tc>, window_params = [{transform_indices = @transform_0, window_bounds = array<i64: 16, 128>}, {pipeline_mode = #tpu.pipeline_mode<synchronous>, transform_indices = @transform_1, window_bounds = array<i64: 128, 128>}, {pipeline_mode = #tpu.pipeline_mode<synchronous>, transform_indices = @transform_2, window_bounds = array<i64: 1, 128>}, {pipeline_mode = #tpu.pipeline_mode<synchronous>, transform_indices = @transform_3, window_bounds = array<i64: 128, 128>}, {pipeline_mode = #tpu.pipeline_mode<synchronous>, transform_indices = @transform_4, window_bounds = array<i64: 1, 128>}, {pipeline_mode = #tpu.pipeline_mode<synchronous>, transform_indices = @transform_5, window_bounds = array<i64: 128, 16>}, {pipeline_mode = #tpu.pipeline_mode<synchronous>, transform_indices = @transform_6, window_bounds = array<i64: 128, 16>}, {pipeline_mode = #tpu.pipeline_mode<synchronous>, transform_indices = @transform_7, window_bounds = array<i64: 1, 16>}, {transform_indices = @transform_8, window_bounds = array<i64: 16, 16>}]} {
    %c0 = arith.constant 0 : index
    %c0_0 = arith.constant 0 : index
    %0 = vector.load %arg1[%c0, %c0_0] : memref<16x128xf32, #tpu.memory_space<vmem>>, vector<16x128xf32>
    %c0_1 = arith.constant 0 : index
    %c0_2 = arith.constant 0 : index
    %1 = vector.load %arg2[%c0_1, %c0_2] : memref<128x128xf32, #tpu.memory_space<vmem>>, vector<128x128xf32>
    %cst = arith.constant dense<0.000000e+00> : vector<16x128xf32>
    %2 = tpu.matmul %0, %1, %cst {dimension_numbers = #tpu.dot_dimension_numbers<[1], [0], [0], [1], [0, 0, 1, 1], [], []>} : vector<16x128xf32>, vector<128x128xf32>, vector<16x128xf32> -> vector<16x128xf32>
    %c0_3 = arith.constant 0 : index
    %c0_4 = arith.constant 0 : index
    %3 = vector.load %arg3[%c0_3, %c0_4] : memref<1x128xf32, #tpu.memory_space<vmem>>, vector<1x128xf32>
    %4 = vector.broadcast %3 : vector<1x128xf32> to vector<16x128xf32>
    %5 = arith.addf %2, %4 : vector<16x128xf32>
    %cst_5 = arith.constant 0.000000e+00 : f32
    %6 = vector.broadcast %cst_5 : f32 to vector<16x128xf32>
    %7 = arith.maximumf %5, %6 : vector<16x128xf32>
    %c0_6 = arith.constant 0 : index
    %c0_7 = arith.constant 0 : index
    %8 = vector.load %arg4[%c0_6, %c0_7] : memref<128x128xf32, #tpu.memory_space<vmem>>, vector<128x128xf32>
    %cst_8 = arith.constant dense<0.000000e+00> : vector<16x128xf32>
    %9 = tpu.matmul %7, %8, %cst_8 {dimension_numbers = #tpu.dot_dimension_numbers<[1], [0], [0], [1], [0, 0, 1, 1], [], []>} : vector<16x128xf32>, vector<128x128xf32>, vector<16x128xf32> -> vector<16x128xf32>
    %c0_9 = arith.constant 0 : index
    %c0_10 = arith.constant 0 : index
    %10 = vector.load %arg5[%c0_9, %c0_10] : memref<1x128xf32, #tpu.memory_space<vmem>>, vector<1x128xf32>
    %11 = vector.broadcast %10 : vector<1x128xf32> to vector<16x128xf32>
    %12 = arith.addf %9, %11 : vector<16x128xf32>
    %cst_11 = arith.constant 0.000000e+00 : f32
    %13 = vector.broadcast %cst_11 : f32 to vector<16x128xf32>
    %14 = arith.maximumf %12, %13 : vector<16x128xf32>
    %c0_12 = arith.constant 0 : index
    %c0_13 = arith.constant 0 : index
    %15 = vector.load %arg6[%c0_12, %c0_13] : memref<128x16xf32, #tpu.memory_space<vmem>>, vector<128x16xf32>
    %cst_14 = arith.constant dense<0.000000e+00> : vector<16x16xf32>
    %16 = tpu.matmul %14, %15, %cst_14 {dimension_numbers = #tpu.dot_dimension_numbers<[1], [0], [0], [1], [0, 0, 1, 1], [], []>} : vector<16x128xf32>, vector<128x16xf32>, vector<16x16xf32> -> vector<16x16xf32>
    %c0_15 = arith.constant 0 : index
    %c0_16 = arith.constant 0 : index
    %17 = vector.load %arg7[%c0_15, %c0_16] : memref<128x16xf32, #tpu.memory_space<vmem>>, vector<128x16xf32>
    %cst_17 = arith.constant dense<0.000000e+00> : vector<16x16xf32>
    %18 = tpu.matmul %0, %17, %cst_17 {dimension_numbers = #tpu.dot_dimension_numbers<[1], [0], [0], [1], [0, 0, 1, 1], [], []>} : vector<16x128xf32>, vector<128x16xf32>, vector<16x16xf32> -> vector<16x16xf32>
    %19 = arith.addf %16, %18 : vector<16x16xf32>
    %c0_18 = arith.constant 0 : index
    %c0_19 = arith.constant 0 : index
    %20 = vector.load %arg8[%c0_18, %c0_19] : memref<1x16xf32, #tpu.memory_space<vmem>>, vector<1x16xf32>
    %21 = vector.broadcast %20 : vector<1x16xf32> to vector<16x16xf32>
    %22 = arith.addf %19, %21 : vector<16x16xf32>
    %c0_20 = arith.constant 0 : index
    %c0_21 = arith.constant 0 : index
    %23 = vector.load %arg9[%c0_20, %c0_21] : memref<16x16xf32, #tpu.memory_space<vmem>>, vector<16x16xf32>
    tpu.vector_store %arg9[%c0_20, %c0_21], %22 {strides = array<i32>} : memref<16x16xf32, #tpu.memory_space<vmem>>, vector<16x16xf32>,
    return
  }
  func.func @transform_0(%arg0: i32) -> (i32, i32) {
    %c0_i32 = arith.constant 0 : i32
    %c0_i32_0 = arith.constant 0 : i32
    return %arg0, %c0_i32 : i32, i32
  }
  func.func @transform_1(%arg0: i32) -> (i32, i32) {
    %c0_i32 = arith.constant 0 : i32
    %c0_i32_0 = arith.constant 0 : i32
    %c0_i32_1 = arith.constant 0 : i32
    return %c0_i32, %c0_i32_0 : i32, i32
  }
  func.func @transform_2(%arg0: i32) -> (i32, i32) {
    %c0_i32 = arith.constant 0 : i32
    %c0_i32_0 = arith.constant 0 : i32
    %c0_i32_1 = arith.constant 0 : i32
    return %c0_i32, %c0_i32_0 : i32, i32
  }
  func.func @transform_3(%arg0: i32) -> (i32, i32) {
    %c0_i32 = arith.constant 0 : i32
    %c0_i32_0 = arith.constant 0 : i32
    %c0_i32_1 = arith.constant 0 : i32
    return %c0_i32, %c0_i32_0 : i32, i32
  }
  func.func @transform_4(%arg0: i32) -> (i32, i32) {
    %c0_i32 = arith.constant 0 : i32
    %c0_i32_0 = arith.constant 0 : i32
    %c0_i32_1 = arith.constant 0 : i32
    return %c0_i32, %c0_i32_0 : i32, i32
  }
  func.func @transform_5(%arg0: i32) -> (i32, i32) {
    %c0_i32 = arith.constant 0 : i32
    %c0_i32_0 = arith.constant 0 : i32
    %c0_i32_1 = arith.constant 0 : i32
    return %c0_i32, %c0_i32_0 : i32, i32
  }
  func.func @transform_6(%arg0: i32) -> (i32, i32) {
    %c0_i32 = arith.constant 0 : i32
    %c0_i32_0 = arith.constant 0 : i32
    %c0_i32_1 = arith.constant 0 : i32
    return %c0_i32, %c0_i32_0 : i32, i32
  }
  func.func @transform_7(%arg0: i32) -> (i32, i32) {
    %c0_i32 = arith.constant 0 : i32
    %c0_i32_0 = arith.constant 0 : i32
    %c0_i32_1 = arith.constant 0 : i32
    return %c0_i32, %c0_i32_0 : i32, i32
  }
  func.func @transform_8(%arg0: i32) -> (i32, i32) {
    %c0_i32 = arith.constant 0 : i32
    %c0_i32_0 = arith.constant 0 : i32
    return %arg0, %c0_i32 : i32, i32
  }
}

</mosaic_0001>

<bundles_post_ra>
// kernel: _apply_features.1
= control target key start
LH: loop header
LB: loop body
LE: loop exit
PB: predicated region body
PF: predicated region fallthrough
CT: control target
= control target key end

     0   :  { %s1178_s27 = smov 0   ;;  %s1411_s0 = inlined_call_operand.vmem [shape: f32[25,128], index: 0, kind: input, shape index: {}]   ;;  %s1412_s1 = inlined_call_operand.vmem [shape: f32[128,128], index: 1, kind: input, shape index: {}]   ;;  %s1413_s2 = inlined_call_operand.vmem [shape: f32[1,128], index: 2, kind: input, shape index: {}]   ;;  %s1414_s3 = inlined_call_operand.vmem [shape: f32[128,128], index: 3, kind: input, shape index: {}]   ;;  %s1415_s4 = inlined_call_operand.vmem [shape: f32[1,128], index: 4, kind: input, shape index: {}]   ;;  %s1416_s5 = inlined_call_operand.vmem [shape: f32[128,16], index: 5, kind: input, shape index: {}]   ;;  %s1417_s6 = inlined_call_operand.vmem [shape: f32[128,16], index: 6, kind: input, shape index: {}]   ;;  %s1418_s7 = inlined_call_operand.vmem [shape: f32[1,16], index: 7, kind: input, shape index: {}]   ;;  %s1419_s8 = inlined_call_operand.vmem [shape: f32[25,16], index: 8, kind: output, shape index: {}]  }
   0x1 LB: > { %s761_s28 = sadd.s32 4294967295, %s1131_s27   ;;  %p765_p0 = scmp.ge.s32.totalorder %s1131_s27, 1  ;;  %s1131_s27 = sphi %s1178_s27, %s18_s27  }
   0x2   : > { %p263_p1 = scmp.lt.s32.totalorder %s1131_s27, 3 }
   0x4   : > { %p264_p2 = pnand %p765_p0, %p263_p1 }
   0x5   : > { %v311_v0 = vld [vmem:[%s1412_s1] sm:$0xff] (!%p264_p2)  ;;  %v312_v1 = vld [vmem:[%s1412_s1 + $0x8] sm:$0xff] (!%p264_p2)  ;;  %v313_v2 = vld [vmem:[%s1412_s1 + $0x10] sm:$0xff] (!%p264_p2)  ;;  %s766_s13 = sshll.u32 (!%p264_p2), %s761_s28, 1  ;;  %vm702_vm0 = vcmask (!%p264_p2), 130048  }
   0x6   : > { %267 = sbr.rel (%p264_p2) target bundleno = 693 (0x2b5), region = 52  ;;  %v987_v3 = vpack.c.bf16 (!%p264_p2), %v312_v1, %v311_v0  ;;  %v314_v4 = vld [vmem:[%s1412_s1 + $0x18] sm:$0xff] (!%p264_p2)  ;;  %p298_p3 = scmp.lt.s32.totalorder (!%p264_p2), %s766_s13, 3  ;;  %v315_v6 = vld [vmem:[%s1412_s1 + $0x20] sm:$0xff] (!%p264_p2)  ;;  %v316_v7 = vld [vmem:[%s1412_s1 + $0x28] sm:$0xff] (!%p264_p2) }
   0x7   : > { %v991_v5 = vpack.c.bf16 (!%p264_p2), %v314_v4, %v313_v2  ;;  %v995_v8 = vpack.c.bf16 (!%p264_p2), %v316_v7, %v315_v6  ;;  %v317_v9 = vld [vmem:[%s1412_s1 + $0x30] sm:$0xff] (!%p264_p2)  ;;  %v318_v10 = vld [vmem:[%s1412_s1 + $0x38] sm:$0xff] (!%p264_p2)  ;;  %v319_v13 = vld [vmem:[%s1412_s1 + $0x40] sm:$0xff] (!%p264_p2) }
   0x8   : > { %988 = vmatprep.subr.bf16.mxu1 (!%p264_p2), %v987_v3  ;;  %v999_v12 = vpack.c.bf16 (!%p264_p2), %v318_v10, %v317_v9  ;;  %v320_v14 = vld [vmem:[%s1412_s1 + $0x48] sm:$0xff] (!%p264_p2)  ;;  %v321_v16 = vld [vmem:[%s1412_s1 + $0x50] sm:$0xff] (!%p264_p2)  ;;  %v322_v17 = vld [vmem:[%s1412_s1 + $0x58] sm:$0xff] (!%p264_p2) }
   0x9   : > { %990 = vmatpush3.bf16.msra.mxu1 (!%p264_p2), %v987_v3  ;;  %v1003_v15 = vpack.c.bf16 (!%p264_p2), %v320_v14, %v319_v13  ;;  %v1007_v18 = vpack.c.bf16 (!%p264_p2), %v322_v17, %v321_v16  ;;  %v323_v19 = vld [vmem:[%s1412_s1 + $0x60] sm:$0xff] (!%p264_p2)  ;;  %v324_v20 = vld [vmem:[%s1412_s1 + $0x68] sm:$0xff] (!%p264_p2)  ;;  %v325_v22 = vld [vmem:[%s1412_s1 + $0x70] sm:$0xff] (!%p264_p2) }
   0xa   : > { %992 = vmatprep.subr.bf16.mxu1 (!%p264_p2), %v991_v5  ;;  %v1011_v21 = vpack.c.bf16 (!%p264_p2), %v324_v20, %v323_v19  ;;  %v326_v23 = vld [vmem:[%s1412_s1 + $0x78] sm:$0xff] (!%p264_p2)  ;;  %v411_v25 = vld [vmem:[%s1414_s3] sm:$0xff] (!%p264_p2)  ;;  %v412_v26 = vld [vmem:[%s1414_s3 + $0x8] sm:$0xff] (!%p264_p2) }
   0xb   : > { %v1015_v24 = vpack.c.bf16 (!%p264_p2), %v326_v23, %v325_v22  ;;  %v1019_v27 = vpack.c.bf16 (!%p264_p2), %v412_v26, %v411_v25  ;;  %v413_v28 = vld [vmem:[%s1414_s3 + $0x10] sm:$0xff] (!%p264_p2)  ;;  %v414_v29 = vld [vmem:[%s1414_s3 + $0x18] sm:$0xff] (!%p264_p2)  ;;  %v415_v32 = vld [vmem:[%s1414_s3 + $0x20] sm:$0xff] (!%p264_p2) }
   0xc   : > { %v1023_v31 = vpack.c.bf16 (!%p264_p2), %v414_v29, %v413_v28  ;;  %v416_v33 = vld [vmem:[%s1414_s3 + $0x28] sm:$0xff] (!%p264_p2)  ;;  %v417_v35 = vld [vmem:[%s1414_s3 + $0x30] sm:$0xff] (!%p264_p2)  ;;  %v418_v36 = vld [vmem:[%s1414_s3 + $0x38] sm:$0xff] (!%p264_p2) }
   0xd   : > { %s1421_s13 = smov (!%p298_p3, %s766_s13), 3  ;;  %994 = vmatpush3.bf16.msra.mxu1 %v991_v5  ;;  %v1027_v34 = vpack.c.bf16 %v416_v33, %v415_v32  ;;  %v1031_v37 = vpack.c.bf16 %v418_v36, %v417_v35  ;;  %v419_v38 = vld [vmem:[%s1414_s3 + $0x40] sm:$0xff]  ;;  %v420_v39 = vld [vmem:[%s1414_s3 + $0x48] sm:$0xff]  ;;  %v421_v41 = vld [vmem:[%s1414_s3 + $0x50] sm:$0xff] }
   0xe   : > { %s767_s20 = sshll.u32 %s1421_s13, 3  ;;  %996 = vmatprep.subr.bf16.mxu1 %v995_v8  ;;  %v1035_v40 = vpack.c.bf16 %v420_v39, %v419_v38  ;;  %v422_v42 = vld [vmem:[%s1414_s3 + $0x58] sm:$0xff]  ;;  %v423_v44 = vld [vmem:[%s1414_s3 + $0x60] sm:$0xff]  ;;  %v424_v45 = vld [vmem:[%s1414_s3 + $0x68] sm:$0xff] }
   0xf   : > { %s1218_s28 = scalar_lea.vmem %s1411_s0, %s767_s20  ;;  %v1039_v43 = vpack.c.bf16 %v422_v42, %v421_v41  ;;  %v1043_v46 = vpack.c.bf16 %v424_v45, %v423_v44  ;;  %v425_v47 = vld [vmem:[%s1414_s3 + $0x70] sm:$0xff]  ;;  %v426_v48 = vld [vmem:[%s1414_s3 + $0x78] sm:$0xff]  ;;  %v527_v50 = vld [vmem:[%s1417_s6] sm:$0xff]  ;;  %s307_s15 = scalar_lea.vmem %s1419_s8, %s767_s20 }
  0x10   : > { %v309_v11 = vld [vmem:[%s1218_s28] sm:$0xff]  ;;  %v1258_v30 = vld [vmem:[%s1218_s28 + $0x8] sm:$0xff]  ;;  %v1047_v49 = vpack.c.bf16 %v426_v48, %v425_v47  ;;  %v529_v52 = vld [vmem:[%s1417_s6 + $0x10] sm:$0xff] }
  0x11   : > { %879 = vmatprep.mubr.f32.mxu1 %v309_v11  ;;  %949 = vmatprep.mubr.f32.mxu0 %v309_v11  ;;  %v528_v51 = vld [vmem:[%s1417_s6 + $0x8] sm:$0xff]  ;;  %v530_v54 = vld [vmem:[%s1417_s6 + $0x18] sm:$0xff]  ;;  %v531_v56 = vld [vmem:[%s1417_s6 + $0x20] sm:$0xff] }
  0x12   : > { %998 = vmatpush3.bf16.msra.mxu1 %v995_v8  ;;  %v1051_v53 = vpack.c.bf16 %v528_v51, %v527_v50  ;;  %v1055_v55 = vpack.c.bf16 %v530_v54, %v529_v52  ;;  %v532_v57 = vld [vmem:[%s1417_s6 + $0x28] sm:$0xff]  ;;  %v533_v59 = vld [vmem:[%s1417_s6 + $0x30] sm:$0xff]  ;;  %v534_v60 = vld [vmem:[%s1417_s6 + $0x38] sm:$0xff] }
  0x13   : > { %1000 = vmatprep.subr.bf16.mxu1 %v999_v12  ;;  %v1059_v58 = vpack.c.bf16 %v532_v57, %v531_v56  ;;  %v1063_v61 = vpack.c.bf16 %v534_v60, %v533_v59  ;;  %v535_v62 = vld [vmem:[%s1417_s6 + $0x40] sm:$0xff]  ;;  %v536_v63 = vld [vmem:[%s1417_s6 + $0x48] sm:$0xff]  ;;  %v537_v1 = vld [vmem:[%s1417_s6 + $0x50] sm:$0xff] }
  0x14   : > { %1052 = vmatprep.subr.bf16.mxu0 %v1051_v53  ;;  %v1067_v0 = vpack.c.bf16 %v536_v63, %v535_v62  ;;  %v538_v2 = vld [vmem:[%s1417_s6 + $0x58] sm:$0xff]  ;;  %v539_v4 = vld [vmem:[%s1417_s6 + $0x60] sm:$0xff]  ;;  %v540_v5 = vld [vmem:[%s1417_s6 + $0x68] sm:$0xff] }
  0x15   : > { %1054 = vmatpush3.bf16.msra.mxu0 %v1051_v53  ;;  %v1071_v3 = vpack.c.bf16 %v538_v2, %v537_v1  ;;  %v1075_v6 = vpack.c.bf16 %v540_v5, %v539_v4  ;;  %v541_v7 = vld [vmem:[%s1417_s6 + $0x70] sm:$0xff]  ;;  %v542_v8 = vld [vmem:[%s1417_s6 + $0x78] sm:$0xff]  ;;  %v511_v10 = vld [vmem:[%s1416_s5] sm:$0xff] }
  0x16   : > { %1002 = vmatpush3.bf16.msra.mxu1 %v999_v12  ;;  %1056 = vmatprep.subr.bf16.mxu0 %v1055_v55  ;;  %v1079_v9 = vpack.c.bf16 %v542_v8, %v541_v7  ;;  %v512_v11 = vld [vmem:[%s1416_s5 + $0x8] sm:$0xff]  ;;  %v513_v13 = vld [vmem:[%s1416_s5 + $0x10] sm:$0xff]  ;;  %v514_v14 = vld [vmem:[%s1416_s5 + $0x18] sm:$0xff] }
  0x17   : > { %1004 = vmatprep.subr.bf16.mxu1 %v1003_v15  ;;  %v1083_v12 = vpack.c.bf16 %v512_v11, %v511_v10  ;;  %v515_v16 = vld [vmem:[%s1416_s5 + $0x20] sm:$0xff]  ;;  %v516_v17 = vld [vmem:[%s1416_s5 + $0x28] sm:$0xff]  ;;  %v517_v19 = vld [vmem:[%s1416_s5 + $0x30] sm:$0xff] }
  0x18   : > { %v518_v20 = vld [vmem:[%s1416_s5 + $0x38] sm:$0xff]  ;;  %v519_v22 = vld [vmem:[%s1416_s5 + $0x40] sm:$0xff]  ;;  %v520_v23 = vld [vmem:[%s1416_s5 + $0x48] sm:$0xff] }
  0x19   : > { %1058 = vmatpush3.bf16.msra.mxu0 %v1055_v55  ;;  %v521_v25 = vld [vmem:[%s1416_s5 + $0x50] sm:$0xff]  ;;  %v522_v26 = vld [vmem:[%s1416_s5 + $0x58] sm:$0xff]  ;;  %v523_v28 = vld [vmem:[%s1416_s5 + $0x60] sm:$0xff] }
  0x1a   : > { %1006 = vmatpush3.bf16.msra.mxu1 %v1003_v15  ;;  %1060 = vmatprep.subr.bf16.mxu0 %v1059_v58  ;;  %v1087_v15 = vpack.c.bf16 %v514_v14, %v513_v13  ;;  %v524_v29 = vld [vmem:[%s1416_s5 + $0x68] sm:$0xff]  ;;  %v525_v38 = vld [vmem:[%s1416_s5 + $0x70] sm:$0xff]  ;;  %v526_v39 = vld [vmem:[%s1416_s5 + $0x78] sm:$0xff] }
  0x1b   : > { %1008 = vmatprep.subr.bf16.mxu1 %v1007_v18  ;;  %v771_v41 = vld [vmem:[%s1415_s4] ss:$0 sm:$0xff] }
  0x1c   : > { %v772_v48 = vld [vmem:[%s1418_s7] ss:$0 sm:$0xff] }
  0x1d   : > { %1062 = vmatpush3.bf16.msra.mxu0 %v1059_v58 }
  0x1e   : > { %1010 = vmatpush3.bf16.msra.mxu1 %v1007_v18  ;;  %1064 = vmatprep.subr.bf16.mxu0 %v1063_v61  ;;  %v1091_v18 = vpack.c.bf16 %v516_v17, %v515_v16 }
  0x1f   : > { %1012 = vmatprep.subr.bf16.mxu1 %v1011_v21 }
  0x21   : > { %1066 = vmatpush3.bf16.msra.mxu0 %v1063_v61 }
  0x22   : > { %1014 = vmatpush3.bf16.msra.mxu1 %v1011_v21  ;;  %1068 = vmatprep.subr.bf16.mxu0 %v1067_v0  ;;  %v1095_v21 = vpack.c.bf16 %v518_v20, %v517_v19 }
  0x23   : > { %1016 = vmatprep.subr.bf16.mxu1 %v1015_v24 }
  0x25   : > { %1070 = vmatpush3.bf16.msra.mxu0 %v1067_v0 }
  0x26   : > { %1018 = vmatpush3.bf16.msra.mxu1 %v1015_v24  ;;  %1072 = vmatprep.subr.bf16.mxu0 %v1071_v3  ;;  %v1099_v24 = vpack.c.bf16 %v520_v23, %v519_v22 }
  0x27   : > { %1020 = vmatprep.subr.bf16.mxu1 %v1019_v27 }
  0x29   : > { %880 = vmatmul.mubr.f32.vlgmr.msra.gmra.mrb[0].mxu1 %v1258_v30  ;;  %1074 = vmatpush3.bf16.msra.mxu0 %v1071_v3 }
  0x2a   : > { %1022 = vmatpush3.bf16.msra.mxu1 %v1019_v27  ;;  %1076 = vmatprep.subr.bf16.mxu0 %v1075_v6  ;;  %v1103_v27 = vpack.c.bf16 %v522_v26, %v521_v25 }
  0x2b   : > { %1024 = vmatprep.subr.bf16.mxu1 %v1023_v31 }
  0x2d   : > { %1078 = vmatpush3.bf16.msra.mxu0 %v1075_v6 }
  0x2e   : > { %1026 = vmatpush3.bf16.msra.mxu1 %v1023_v31  ;;  %1080 = vmatprep.subr.bf16.mxu0 %v1079_v9  ;;  %v770_v31 = vld [vmem:[%s1413_s2] ss:$0 sm:$0xff] }
  0x2f   : > { %1028 = vmatprep.subr.bf16.mxu1 %v1027_v34 }
  0x31   : > { %1082 = vmatpush3.bf16.msra.mxu0 %v1079_v9 }
  0x32   : > { %1030 = vmatpush3.bf16.msra.mxu1 %v1027_v34  ;;  %1084 = vmatprep.subr.bf16.mxu0 %v1083_v12 }
  0x33   : > { %1032 = vmatprep.subr.bf16.mxu1 %v1031_v37 }
  0x34   : > { %950 = vmatmul.mubr.f32.vlgmr.msra.gmra.mrb[0].mxu0 %v1258_v30  ;;  %v1107_v30 = vpack.c.bf16 %v524_v29, %v523_v28 }
  0x35   : > { %1086 = vmatpush3.bf16.msra.mxu0 %v1083_v12 }
  0x36   : > { %1034 = vmatpush3.bf16.msra.mxu1 %v1031_v37  ;;  %1088 = vmatprep.subr.bf16.mxu0 %v1087_v15 }
  0x37   : > { %1036 = vmatprep.subr.bf16.mxu1 %v1035_v40 }
  0x39   : > { %1090 = vmatpush3.bf16.msra.mxu0 %v1087_v15 }
  0x3a   : > { %1038 = vmatpush3.bf16.msra.mxu1 %v1035_v40  ;;  %1092 = vmatprep.subr.bf16.mxu0 %v1091_v18  ;;  %v1111_v40 = vpack.c.bf16 %v526_v39, %v525_v38 }
  0x3b   : > { %1040 = vmatprep.subr.bf16.mxu1 %v1039_v43 }
  0x3d   : > { %1094 = vmatpush3.bf16.msra.mxu0 %v1091_v18 }
  0x3e   : > { %1042 = vmatpush3.bf16.msra.mxu1 %v1039_v43  ;;  %1096 = vmatprep.subr.bf16.mxu0 %v1095_v21 }
  0x3f   : > { %1044 = vmatprep.subr.bf16.mxu1 %v1043_v46 }
  0x41   : > { %1098 = vmatpush3.bf16.msra.mxu0 %v1095_v21 }
  0x42   : > { %1046 = vmatpush3.bf16.msra.mxu1 %v1043_v46  ;;  %1100 = vmatprep.subr.bf16.mxu0 %v1099_v24 }
  0x43   : > { %1048 = vmatprep.subr.bf16.mxu1 %v1047_v49 }
  0x45   : > { %1102 = vmatpush3.bf16.msra.mxu0 %v1099_v24 }
  0x46   : > { %1050 = vmatpush3.bf16.msra.mxu1 %v1047_v49  ;;  %1104 = vmatprep.subr.bf16.mxu0 %v1103_v27 }
  0x49   : > { %1106 = vmatpush3.bf16.msra.mxu0 %v1103_v27 }
  0x4a   : > { %1108 = vmatprep.subr.bf16.mxu0 %v1107_v30 }
  0x4d   : > { %1110 = vmatpush3.bf16.msra.mxu0 %v1107_v30 }
  0x4e   : > { %1112 = vmatprep.subr.bf16.mxu0 %v1111_v40 }
  0x51   : > { %1114 = vmatpush3.bf16.msra.mxu0 %v1111_v40 }
  0xfc   : > { %v881_v32 = vpop.f32.mrb[0].mxu1 }
  0xfd   : > { %v406_v33 = vadd.f32 %v881_v32, %v770_v31  ;;  %v400_v34 = vpop.f32.mrb[1].mxu1 }
  0xfe   : > { %v401_v35 = vadd.f32 %v770_v31, %v400_v34 }
  0xff   : > { %v410_v37 = vmax.f32 %v406_v33, 0.0 }
 0x100   : > { %v409_v36 = vmax.f32 %v401_v35, 0.0 }
 0x102   : > { %914 = vmatprep.mubr.f32.mxu1 %v409_v36 }
 0x103   : > { %915 = vmatmul.mubr.f32.vlgmr.msra.gmra.mrb[2].mxu1 %v410_v37 }
 0x1d6   : > { %v916_v42 = vpop.f32.mrb[2].mxu1 }
 0x1d7   : > { %v506_v43 = vadd.f32 %v916_v42, %v771_v41  ;;  %v500_v44 = vpop.f32.mrb[3].mxu1 }
 0x1d8   : > { %v501_v45 = vadd.f32 %v771_v41, %v500_v44 }
 0x1d9   : > { %v510_v47 = vmax.f32 %v506_v43, 0.0 }
 0x1da   : > { %v509_v46 = vmax.f32 %v501_v45, 0.0 }
 0x1dc   : > { %984 = vmatprep.mubr.f32.mxu0 %v509_v46 }
 0x1dd   : > { %985 = vmatmul.mubr.f32.vlgmr.msra.gmra.mrb[0].mxu0 %v510_v47 }
 0x2b0   : > { %v986_v49 = vpop.f32.mrb[0].mxu0 }
 0x2b1   : > { %v684_v50 = vpop.f32.mrb[1].mxu0  ;;  %v701_v52 = vadd.f32 %v986_v49, %v772_v48 }
 0x2b2   : > { %v700_v51 = vadd.f32 %v772_v48, %v684_v50 }
 0x2b3   : > { %704 = vst.msk [vmem:[%s307_s15 + $0x8] sm:$0xff] %vm702_vm0, %v701_v52 }
 0x2b4   : > { %703 = vst.msk [vmem:[%s307_s15] sm:$0xff] %vm702_vm0, %v700_v51 }
 0x2b5 PF: > { %s18_s27 = sadd.s32 1, %s1131_s27  }
 0x2b6   : > { %p15_p4 = scmp.ge.s32.totalorder %s18_s27, 4  }
 0x2b8   :  { %17 = sbr.rel (!%p15_p4) target bundleno = 1 (0x1), region = 82 }

</bundles_post_ra>
